<compile_context>
chip_gen: v7x
topology: tpu7x:2x2x1
jax: 0.10.0
libtpu: 0.0.40
codegen_flags: <defaults>
</compile_context>

<pallas_src>
import jax
import jax.numpy as jnp
from jax.experimental import pallas as pl
from jax.experimental.pallas import tpu as pltpu

IN_EPS = 1e-3   # InstanceNorm2d eps used by the module
BN_EPS = 1e-5   # BatchNorm2d default eps (folded in glue)


def _recip(d):
    # EUP approximate reciprocal + one Newton-Raphson refinement (full f32 accuracy).
    r = pl.reciprocal(d, approx=True)
    return r * (2.0 - d * r)


def make_gcl_kernel(Bb, C, M, N):
    bf16 = jnp.bfloat16

    def inorm_last(v):
        # InstanceNorm over the last axis (points), biased variance, no affine.
        mu = jnp.mean(v, axis=-1, keepdims=True)
        d = v - mu
        var = jnp.mean(d * d, axis=-1, keepdims=True)
        return d * jax.lax.rsqrt(var + IN_EPS)

    def inorm_rows(v):
        # InstanceNorm over axis 0 (clusters) for the [M, C]-layout OAFilter stage.
        mu = jnp.mean(v, axis=0, keepdims=True)
        d = v - mu
        var = jnp.mean(d * d, axis=0, keepdims=True)
        return d * jax.lax.rsqrt(var + IN_EPS)

    def gcl_kernel(x_ref, ccol_ref, crow_ref, mcol_ref,
                   wp_ref, w1t_ref, w2_ref, w3t_ref, wu_ref, o_ref):
        ccol = ccol_ref[...]                              # [C, 4]
        crow = crow_ref[...]                              # [6, C]
        mcol = mcol_ref[...]                              # [M, 5]
        sp, tp = ccol[:, 0:1], ccol[:, 1:2]               # [C, 1]
        su, tu = ccol[:, 2:3], ccol[:, 3:4]
        s1, t1 = crow[0:1, :], crow[1:2, :]               # [1, C]
        s3, t3 = crow[2:3, :], crow[3:4, :]
        b1, b3 = crow[4:5, :], crow[5:6, :]
        bp, bu = mcol[:, 0:1], mcol[:, 1:2]               # [M, 1]
        s2, t2, b2 = mcol[:, 2:3], mcol[:, 3:4], mcol[:, 4:5]
        wp, w1t, w2 = wp_ref[...], w1t_ref[...], w2_ref[...]
        w3t, wu = w3t_ref[...], wu_ref[...]

        for i in range(Bb):                               # Bb is a small compile-time constant
            x = x_ref[i]                                  # [C, N] f32

            # Shared InstanceNorm over the point axis (DiffPool & DiffUnpool both start with it).
            xn = inorm_last(x)

            # ---------------- DiffPool ----------------
            h = jnp.maximum(xn * sp + tp, 0.0)
            embed = jnp.dot(wp, h.astype(bf16),
                            preferred_element_type=jnp.float32) + bp          # [M, N]
            e = jnp.exp(embed - jnp.max(embed, axis=-1, keepdims=True))
            S = e * _recip(jnp.sum(e, axis=-1, keepdims=True))                # softmax over N
            # xd^T[m, c] = sum_n S[m, n] * x[c, n]   (cluster-major layout for the OAFilter)
            xdT = jax.lax.dot_general(S.astype(bf16), x.astype(bf16),
                                      (((1,), (1,)), ((), ())),
                                      preferred_element_type=jnp.float32)     # [M, C]

            # -------- OAFilter on clusters (lane-dense [M, C] layout) --------
            h1 = jnp.maximum(inorm_rows(xdT) * s1 + t1, 0.0)
            out1 = jnp.dot(h1.astype(bf16), w1t,
                           preferred_element_type=jnp.float32) + b1           # [M, C]
            h2 = jnp.maximum(out1 * s2 + t2, 0.0)
            out2 = jnp.dot(w2, h2.astype(bf16),
                           preferred_element_type=jnp.float32) + b2           # [M, C]
            mid = out1 + out2
            h3 = jnp.maximum(inorm_rows(mid) * s3 + t3, 0.0)
            out3 = jnp.dot(h3.astype(bf16), w3t,
                           preferred_element_type=jnp.float32) + b3           # [M, C]
            xdT = out3 + xdT                                                   # residual (no shot_cut)

            # ---------------- DiffUnpool ----------------
            hu = jnp.maximum(xn * su + tu, 0.0)                                # reuses shared xn
            eu = jnp.dot(wu, hu.astype(bf16),
                         preferred_element_type=jnp.float32) + bu             # [M, N]
            ee = jnp.exp(eu - jnp.max(eu, axis=0, keepdims=True))
            Su = ee * _recip(jnp.sum(ee, axis=0, keepdims=True))              # softmax over M
            # out[c, n] = sum_m xd^T[m, c] * Su[m, n]
            o_ref[i] = jax.lax.dot_general(xdT.astype(bf16), Su.astype(bf16),
                                           (((0,), (0,)), ((), ())),
                                           preferred_element_type=jnp.float32)  # [C, N]

    return gcl_kernel


def prepare_params(params):
    """Pack the small per-channel vectors into a few slabs and pre-cast weights to bf16 (once)."""
    ccol = jnp.stack([params[k] for k in ("sp", "tp", "su", "tu")],
                     axis=1).astype(jnp.float32)                              # [C, 4]
    crow = jnp.stack([params[k] for k in ("s1", "t1", "s3", "t3", "b1", "b3")],
                     axis=0).astype(jnp.float32)                              # [6, C]
    mcol = jnp.stack([params[k] for k in ("bp", "bu", "s2", "t2", "b2")],
                     axis=1).astype(jnp.float32)                              # [M, 5]
    wp = params["wp"].astype(jnp.bfloat16)                                    # [M, C]
    w1t = params["w1"].T.astype(jnp.bfloat16)                                 # [C, C] pre-transposed
    w2 = params["w2"].astype(jnp.bfloat16)                                    # [M, M]
    w3t = params["w3"].T.astype(jnp.bfloat16)                                 # [C, C] pre-transposed
    wu = params["wu"].astype(jnp.bfloat16)                                    # [M, C]
    return (ccol, crow, mcol, wp, w1t, w2, w3t, wu)


def _pick_block_batch(B, C, N, target_bytes=512 * 1024):
    """Largest divisor of B whose [Bb, C, N] f32 slab stays under target, keeping >= 2 grid steps."""
    per_sample = C * N * 4
    cap = B if B < 2 else max(1, B // 2)          # keep >= 2 steps so both v7x TCs get work
    best = 1
    for bb in range(1, cap + 1):
        if B % bb == 0 and bb * per_sample <= target_bytes:
            best = bb
    return best


def _vmem_limit_bytes(Bb, C, M, N, consts):
    """Generation-aware VMEM budget derived from actual buffer sizes (v7x has 64 MiB/TC)."""
    slab_cn = Bb * C * N * 4
    slab_mn = Bb * M * N * 4
    slab_mc = Bb * M * C * 4
    const_bytes = sum(int(a.size) * a.dtype.itemsize for a in consts)
    est = 4 * slab_cn                                    # double-buffered x and out blocks
    est += 8 * slab_cn + 8 * slab_mn + 6 * slab_mc       # live f32 intermediates (generous)
    est += 2 * const_bytes + (2 << 20)
    try:
        cap = int(pltpu.get_tpu_info().vmem_capacity_bytes)
    except Exception:
        cap = 64 * 1024 * 1024                           # conservative (v7x) fallback
    lo = 16 * 1024 * 1024
    hi = max(lo, int(0.75 * cap))
    return int(min(max(est, lo), hi))


def global_cluster_layer(feats_nchw, packed):
    """feats_nchw: [B, C, N, 1] float32 -> [B, C, N, 1] float32 (GlobalClusterLayer forward)."""
    ccol, crow, mcol, wp, w1t, w2, w3t, wu = packed
    feats = feats_nchw[..., 0]                           # [B, C, N]   (W == 1)
    B, C, N = feats.shape
    M = wp.shape[0]

    Bb = _pick_block_batch(B, C, N)
    consts = [ccol, crow, mcol, wp, w1t, w2, w3t, wu]

    def const_spec(a):
        nd = a.ndim
        return pl.BlockSpec(a.shape, lambda b, _nd=nd: (0,) * _nd)

    io_spec = pl.BlockSpec((Bb, C, N), lambda b: (b, 0, 0))

    out = pl.pallas_call(
        make_gcl_kernel(Bb, C, M, N),
        out_shape=jax.ShapeDtypeStruct((B, C, N), jnp.float32),
        grid_spec=pltpu.PrefetchScalarGridSpec(
            num_scalar_prefetch=0,
            grid=(B // Bb,),
            in_specs=[io_spec] + [const_spec(a) for a in consts],
            out_specs=io_spec,
        ),
        compiler_params=pltpu.CompilerParams(
            dimension_semantics=("parallel",),           # shards the batch-block axis across v7x TCs
            vmem_limit_bytes=_vmem_limit_bytes(Bb, C, M, N, consts),
        ),
    )(feats, *consts)
    return out[..., None]                                # back to [B, C, N, 1]


def init_params(key, C, M):
    ks = jax.random.split(key, 16)

    def bn_fold(k, n):
        k1, k2, k3, k4 = jax.random.split(k, 4)
        gamma = 1.0 + 0.1 * jax.random.normal(k1, (n,), jnp.float32)
        beta = 0.1 * jax.random.normal(k2, (n,), jnp.float32)
        rm = 0.1 * jax.random.normal(k3, (n,), jnp.float32)
        rv = 1.0 + 0.1 * jax.random.uniform(k4, (n,), jnp.float32)
        s = gamma / jnp.sqrt(rv + BN_EPS)
        t = beta - rm * s
        return s, t

    sp, tp = bn_fold(ks[0], C)
    s1, t1 = bn_fold(ks[1], C)
    s2, t2 = bn_fold(ks[2], M)
    s3, t3 = bn_fold(ks[3], C)
    su, tu = bn_fold(ks[4], C)

    def w(k, o, i):
        return 0.1 * jax.random.normal(k, (o, i), jnp.float32)

    def b(k, n):
        return 0.05 * jax.random.normal(k, (n,), jnp.float32)

    return dict(
        sp=sp, tp=tp, wp=w(ks[5], M, C), bp=b(ks[6], M),
        s1=s1, t1=t1, w1=w(ks[7], C, C), b1=b(ks[8], C),
        s2=s2, t2=t2, w2=w(ks[9], M, M), b2=b(ks[10], M),
        s3=s3, t3=t3, w3=w(ks[11], C, C), b3=b(ks[12], C),
        su=su, tu=tu, wu=w(ks[13], M, C), bu=b(ks[14], M),
    )


def reference(feats_nchw, p):
    """Pure-JAX mirror of the kernel math (same folded params, same bf16 MXU-operand rounding)."""
    def inorm(v):
        mu = v.mean(-1, keepdims=True)
        var = ((v - mu) ** 2).mean(-1, keepdims=True)
        return (v - mu) / jnp.sqrt(var + IN_EPS)

    def mm(a, b):
        return jnp.dot(a.astype(jnp.bfloat16), b.astype(jnp.bfloat16),
                       preferred_element_type=jnp.float32)

    col = lambda v: v[:, None]
    row = lambda v: v[None, :]

    def one(x):  # x: [C, N]
        xn = inorm(x)
        h = jnp.maximum(xn * col(p["sp"]) + col(p["tp"]), 0.0)
        S = jax.nn.softmax(mm(p["wp"], h) + col(p["bp"]), axis=-1)
        xd = mm(x, S.T)
        h1 = jnp.maximum(inorm(xd) * col(p["s1"]) + col(p["t1"]), 0.0)
        out1 = mm(p["w1"], h1) + col(p["b1"])
        h2 = jnp.maximum(out1 * row(p["s2"]) + row(p["t2"]), 0.0)
        out2 = mm(h2, p["w2"].T) + row(p["b2"])
        mid = out1 + out2
        h3 = jnp.maximum(inorm(mid) * col(p["s3"]) + col(p["t3"]), 0.0)
        xd2 = mm(p["w3"], h3) + col(p["b3"]) + xd
        hu = jnp.maximum(xn * col(p["su"]) + col(p["tu"]), 0.0)
        Su = jax.nn.softmax(mm(p["wu"], hu) + col(p["bu"]), axis=0)
        return mm(xd2, Su)

    return jax.vmap(one)(feats_nchw[..., 0])[..., None]


if __name__ == "__main__":
    key = jax.random.PRNGKey(0)
    k_feat, k_par = jax.random.split(key)
    B, C, N, M = 2, 32, 16, 8          # batch, in_dim, points, cluster_num
    feats = jax.random.normal(k_feat, (B, C, N, 1), jnp.float32)
    params = init_params(k_par, C, M)
    packed = prepare_params(params)    # pack/cast constants once (not per call)

    out = global_cluster_layer(feats, packed)
    out = jax.block_until_ready(out)

    ref = reference(feats, params)
    assert out.shape == (B, C, N, 1)
    err = float(jnp.max(jnp.abs(out - ref)))
    assert jnp.allclose(out, ref, atol=2e-3, rtol=2e-3), err
    print("KERNEL_OK")
</pallas_src>

<mosaic_0001>
module attributes {stable_mosaic.version = 11 : i64} {
  func.func @gcl_kernel(%arg0: i32, %arg1: memref<1x32x16xf32, #tpu.memory_space<vmem>>, %arg2: memref<32x4xf32, #tpu.memory_space<vmem>>, %arg3: memref<6x32xf32, #tpu.memory_space<vmem>>, %arg4: memref<8x5xf32, #tpu.memory_space<vmem>>, %arg5: memref<8x32xbf16, #tpu.memory_space<vmem>>, %arg6: memref<32x32xbf16, #tpu.memory_space<vmem>>, %arg7: memref<8x8xbf16, #tpu.memory_space<vmem>>, %arg8: memref<32x32xbf16, #tpu.memory_space<vmem>>, %arg9: memref<8x32xbf16, #tpu.memory_space<vmem>>, %arg10: memref<1x32x16xf32, #tpu.memory_space<vmem>>) attributes {dimension_semantics = [#tpu.dimension_semantics<parallel>], iteration_bounds = array<i64: 2>, scalar_prefetch = 0 : i64, scratch_operands = 0 : i64, tpu.core_type = #tpu.core_type<tc>, window_params = [{transform_indices = @transform_0, window_bounds = array<i64: 1, 32, 16>}, {pipeline_mode = #tpu.pipeline_mode<synchronous>, transform_indices = @transform_1, window_bounds = array<i64: 32, 4>}, {pipeline_mode = #tpu.pipeline_mode<synchronous>, transform_indices = @transform_2, window_bounds = array<i64: 6, 32>}, {pipeline_mode = #tpu.pipeline_mode<synchronous>, transform_indices = @transform_3, window_bounds = array<i64: 8, 5>}, {pipeline_mode = #tpu.pipeline_mode<synchronous>, transform_indices = @transform_4, window_bounds = array<i64: 8, 32>}, {pipeline_mode = #tpu.pipeline_mode<synchronous>, transform_indices = @transform_5, window_bounds = array<i64: 32, 32>}, {pipeline_mode = #tpu.pipeline_mode<synchronous>, transform_indices = @transform_6, window_bounds = array<i64: 8, 8>}, {pipeline_mode = #tpu.pipeline_mode<synchronous>, transform_indices = @transform_7, window_bounds = array<i64: 32, 32>}, {pipeline_mode = #tpu.pipeline_mode<synchronous>, transform_indices = @transform_8, window_bounds = array<i64: 8, 32>}, {transform_indices = @transform_9, window_bounds = array<i64: 1, 32, 16>}]} {
    %c0 = arith.constant 0 : index
    %c0_0 = arith.constant 0 : index
    %0 = vector.load %arg2[%c0, %c0_0] : memref<32x4xf32, #tpu.memory_space<vmem>>, vector<32x4xf32>
    %c0_1 = arith.constant 0 : index
    %c0_2 = arith.constant 0 : index
    %1 = vector.load %arg3[%c0_1, %c0_2] : memref<6x32xf32, #tpu.memory_space<vmem>>, vector<6x32xf32>
    %c0_3 = arith.constant 0 : index
    %c0_4 = arith.constant 0 : index
    %2 = vector.load %arg4[%c0_3, %c0_4] : memref<8x5xf32, #tpu.memory_space<vmem>>, vector<8x5xf32>
    %3 = vector.extract_strided_slice %0 {offsets = [0, 0], sizes = [32, 1], strides = [1, 1]} : vector<32x4xf32> to vector<32x1xf32>
    %4 = vector.extract_strided_slice %0 {offsets = [0, 1], sizes = [32, 1], strides = [1, 1]} : vector<32x4xf32> to vector<32x1xf32>
    %5 = vector.extract_strided_slice %0 {offsets = [0, 2], sizes = [32, 1], strides = [1, 1]} : vector<32x4xf32> to vector<32x1xf32>
    %6 = vector.extract_strided_slice %0 {offsets = [0, 3], sizes = [32, 1], strides = [1, 1]} : vector<32x4xf32> to vector<32x1xf32>
    %7 = vector.extract_strided_slice %1 {offsets = [0, 0], sizes = [1, 32], strides = [1, 1]} : vector<6x32xf32> to vector<1x32xf32>
    %8 = vector.extract_strided_slice %1 {offsets = [1, 0], sizes = [1, 32], strides = [1, 1]} : vector<6x32xf32> to vector<1x32xf32>
    %9 = vector.extract_strided_slice %1 {offsets = [2, 0], sizes = [1, 32], strides = [1, 1]} : vector<6x32xf32> to vector<1x32xf32>
    %10 = vector.extract_strided_slice %1 {offsets = [3, 0], sizes = [1, 32], strides = [1, 1]} : vector<6x32xf32> to vector<1x32xf32>
    %11 = vector.extract_strided_slice %1 {offsets = [4, 0], sizes = [1, 32], strides = [1, 1]} : vector<6x32xf32> to vector<1x32xf32>
    %12 = vector.extract_strided_slice %1 {offsets = [5, 0], sizes = [1, 32], strides = [1, 1]} : vector<6x32xf32> to vector<1x32xf32>
    %13 = vector.extract_strided_slice %2 {offsets = [0, 0], sizes = [8, 1], strides = [1, 1]} : vector<8x5xf32> to vector<8x1xf32>
    %14 = vector.extract_strided_slice %2 {offsets = [0, 1], sizes = [8, 1], strides = [1, 1]} : vector<8x5xf32> to vector<8x1xf32>
    %15 = vector.extract_strided_slice %2 {offsets = [0, 2], sizes = [8, 1], strides = [1, 1]} : vector<8x5xf32> to vector<8x1xf32>
    %16 = vector.extract_strided_slice %2 {offsets = [0, 3], sizes = [8, 1], strides = [1, 1]} : vector<8x5xf32> to vector<8x1xf32>
    %17 = vector.extract_strided_slice %2 {offsets = [0, 4], sizes = [8, 1], strides = [1, 1]} : vector<8x5xf32> to vector<8x1xf32>
    %c0_5 = arith.constant 0 : index
    %c0_6 = arith.constant 0 : index
    %18 = vector.load %arg5[%c0_5, %c0_6] : memref<8x32xbf16, #tpu.memory_space<vmem>>, vector<8x32xbf16>
    %c0_7 = arith.constant 0 : index
    %c0_8 = arith.constant 0 : index
    %19 = vector.load %arg6[%c0_7, %c0_8] : memref<32x32xbf16, #tpu.memory_space<vmem>>, vector<32x32xbf16>
    %c0_9 = arith.constant 0 : index
    %c0_10 = arith.constant 0 : index
    %20 = vector.load %arg7[%c0_9, %c0_10] : memref<8x8xbf16, #tpu.memory_space<vmem>>, vector<8x8xbf16>
    %c0_11 = arith.constant 0 : index
    %c0_12 = arith.constant 0 : index
    %21 = vector.load %arg8[%c0_11, %c0_12] : memref<32x32xbf16, #tpu.memory_space<vmem>>, vector<32x32xbf16>
    %c0_13 = arith.constant 0 : index
    %c0_14 = arith.constant 0 : index
    %22 = vector.load %arg9[%c0_13, %c0_14] : memref<8x32xbf16, #tpu.memory_space<vmem>>, vector<8x32xbf16>
    %c0_15 = arith.constant 0 : index
    %c0_16 = arith.constant 0 : index
    %c0_17 = arith.constant 0 : index
    %23 = vector.load %arg1[%c0_15, %c0_16, %c0_17] : memref<1x32x16xf32, #tpu.memory_space<vmem>>, vector<1x32x16xf32>
    %24 = vector.shape_cast %23 : vector<1x32x16xf32> to vector<32x16xf32>
    %cst = arith.constant dense<0.000000e+00> : vector<32xf32>
    %25 = vector.multi_reduction <add>, %24, %cst [1] : vector<32x16xf32> to vector<32xf32>
    %26 = vector.shape_cast %25 : vector<32xf32> to vector<32x1xf32>
    %cst_18 = arith.constant 1.600000e+01 : f32
    %27 = vector.broadcast %cst_18 : f32 to vector<32x1xf32>
    %28 = arith.divf %26, %27 : vector<32x1xf32>
    %29 = vector.broadcast %28 : vector<32x1xf32> to vector<32x16xf32>
    %30 = arith.subf %24, %29 : vector<32x16xf32>
    %31 = arith.mulf %30, %30 : vector<32x16xf32>
    %cst_19 = arith.constant dense<0.000000e+00> : vector<32xf32>
    %32 = vector.multi_reduction <add>, %31, %cst_19 [1] : vector<32x16xf32> to vector<32xf32>
    %33 = vector.shape_cast %32 : vector<32xf32> to vector<32x1xf32>
    %cst_20 = arith.constant 1.600000e+01 : f32
    %34 = vector.broadcast %cst_20 : f32 to vector<32x1xf32>
    %35 = arith.divf %33, %34 : vector<32x1xf32>
    %cst_21 = arith.constant 1.000000e-03 : f32
    %36 = vector.broadcast %cst_21 : f32 to vector<32x1xf32>
    %37 = arith.addf %35, %36 : vector<32x1xf32>
    %38 = math.rsqrt %37 : vector<32x1xf32>
    %39 = vector.broadcast %38 : vector<32x1xf32> to vector<32x16xf32>
    %40 = arith.mulf %30, %39 : vector<32x16xf32>
    %41 = vector.broadcast %3 : vector<32x1xf32> to vector<32x16xf32>
    %42 = arith.mulf %40, %41 : vector<32x16xf32>
    %43 = vector.broadcast %4 : vector<32x1xf32> to vector<32x16xf32>
    %44 = arith.addf %42, %43 : vector<32x16xf32>
    %cst_22 = arith.constant 0.000000e+00 : f32
    %45 = vector.broadcast %cst_22 : f32 to vector<32x16xf32>
    %46 = arith.maximumf %44, %45 : vector<32x16xf32>
    %47 = arith.truncf %46 : vector<32x16xf32> to vector<32x16xbf16>
    %cst_23 = arith.constant dense<0.000000e+00> : vector<8x16xf32>
    %48 = tpu.matmul %18, %47, %cst_23 {dimension_numbers = #tpu.dot_dimension_numbers<[1], [0], [0], [1], [0, 0, 1, 1], [], []>} : vector<8x32xbf16>, vector<32x16xbf16>, vector<8x16xf32> -> vector<8x16xf32>
    %49 = vector.broadcast %13 : vector<8x1xf32> to vector<8x16xf32>
    %50 = arith.addf %48, %49 : vector<8x16xf32>
    %cst_24 = arith.constant dense<0xFF800000> : vector<8xf32>
    %51 = vector.multi_reduction <maximumf>, %50, %cst_24 [1] : vector<8x16xf32> to vector<8xf32>
    %52 = vector.shape_cast %51 : vector<8xf32> to vector<8x1xf32>
    %53 = vector.broadcast %52 : vector<8x1xf32> to vector<8x16xf32>
    %54 = arith.subf %50, %53 : vector<8x16xf32>
    %55 = math.exp %54 : vector<8x16xf32>
    %cst_25 = arith.constant dense<0.000000e+00> : vector<8xf32>
    %56 = vector.multi_reduction <add>, %55, %cst_25 [1] : vector<8x16xf32> to vector<8xf32>
    %57 = vector.shape_cast %56 : vector<8xf32> to vector<8x1xf32>
    %58 = tpu.reciprocal %57 {approx = true} : vector<8x1xf32> -> vector<8x1xf32>
    %59 = arith.mulf %57, %58 : vector<8x1xf32>
    %cst_26 = arith.constant 2.000000e+00 : f32
    %60 = vector.broadcast %cst_26 : f32 to vector<8x1xf32>
    %61 = arith.subf %60, %59 : vector<8x1xf32>
    %62 = arith.mulf %58, %61 : vector<8x1xf32>
    %63 = vector.broadcast %62 : vector<8x1xf32> to vector<8x16xf32>
    %64 = arith.mulf %55, %63 : vector<8x16xf32>
    %65 = arith.truncf %64 : vector<8x16xf32> to vector<8x16xbf16>
    %66 = arith.truncf %24 : vector<32x16xf32> to vector<32x16xbf16>
    %cst_27 = arith.constant dense<0.000000e+00> : vector<8x32xf32>
    %67 = tpu.matmul %65, %66, %cst_27 {dimension_numbers = #tpu.dot_dimension_numbers<[1], [1], [0], [0], [0, 0, 1, 0], [], []>} : vector<8x16xbf16>, vector<32x16xbf16>, vector<8x32xf32> -> vector<8x32xf32>
    %cst_28 = arith.constant dense<0.000000e+00> : vector<32xf32>
    %68 = vector.multi_reduction <add>, %67, %cst_28 [0] : vector<8x32xf32> to vector<32xf32>
    %69 = vector.shape_cast %68 : vector<32xf32> to vector<1x32xf32>
    %cst_29 = arith.constant 8.000000e+00 : f32
    %70 = vector.broadcast %cst_29 : f32 to vector<1x32xf32>
    %71 = arith.divf %69, %70 : vector<1x32xf32>
    %72 = vector.broadcast %71 : vector<1x32xf32> to vector<8x32xf32>
    %73 = arith.subf %67, %72 : vector<8x32xf32>
    %74 = arith.mulf %73, %73 : vector<8x32xf32>
    %cst_30 = arith.constant dense<0.000000e+00> : vector<32xf32>
    %75 = vector.multi_reduction <add>, %74, %cst_30 [0] : vector<8x32xf32> to vector<32xf32>
    %76 = vector.shape_cast %75 : vector<32xf32> to vector<1x32xf32>
    %cst_31 = arith.constant 8.000000e+00 : f32
    %77 = vector.broadcast %cst_31 : f32 to vector<1x32xf32>
    %78 = arith.divf %76, %77 : vector<1x32xf32>
    %cst_32 = arith.constant 1.000000e-03 : f32
    %79 = vector.broadcast %cst_32 : f32 to vector<1x32xf32>
    %80 = arith.addf %78, %79 : vector<1x32xf32>
    %81 = math.rsqrt %80 : vector<1x32xf32>
    %82 = vector.broadcast %81 : vector<1x32xf32> to vector<8x32xf32>
    %83 = arith.mulf %73, %82 : vector<8x32xf32>
    %84 = vector.broadcast %7 : vector<1x32xf32> to vector<8x32xf32>
    %85 = arith.mulf %83, %84 : vector<8x32xf32>
    %86 = vector.broadcast %8 : vector<1x32xf32> to vector<8x32xf32>
    %87 = arith.addf %85, %86 : vector<8x32xf32>
    %cst_33 = arith.constant 0.000000e+00 : f32
    %88 = vector.broadcast %cst_33 : f32 to vector<8x32xf32>
    %89 = arith.maximumf %87, %88 : vector<8x32xf32>
    %90 = arith.truncf %89 : vector<8x32xf32> to vector<8x32xbf16>
    %cst_34 = arith.constant dense<0.000000e+00> : vector<8x32xf32>
    %91 = tpu.matmul %90, %19, %cst_34 {dimension_numbers = #tpu.dot_dimension_numbers<[1], [0], [0], [1], [0, 0, 1, 1], [], []>} : vector<8x32xbf16>, vector<32x32xbf16>, vector<8x32xf32> -> vector<8x32xf32>
    %92 = vector.broadcast %11 : vector<1x32xf32> to vector<8x32xf32>
    %93 = arith.addf %91, %92 : vector<8x32xf32>
    %94 = vector.broadcast %15 : vector<8x1xf32> to vector<8x32xf32>
    %95 = arith.mulf %93, %94 : vector<8x32xf32>
    %96 = vector.broadcast %16 : vector<8x1xf32> to vector<8x32xf32>
    %97 = arith.addf %95, %96 : vector<8x32xf32>
    %cst_35 = arith.constant 0.000000e+00 : f32
    %98 = vector.broadcast %cst_35 : f32 to vector<8x32xf32>
    %99 = arith.maximumf %97, %98 : vector<8x32xf32>
    %100 = arith.truncf %99 : vector<8x32xf32> to vector<8x32xbf16>
    %cst_36 = arith.constant dense<0.000000e+00> : vector<8x32xf32>
    %101 = tpu.matmul %20, %100, %cst_36 {dimension_numbers = #tpu.dot_dimension_numbers<[1], [0], [0], [1], [0, 0, 1, 1], [], []>} : vector<8x8xbf16>, vector<8x32xbf16>, vector<8x32xf32> -> vector<8x32xf32>
    %102 = vector.broadcast %17 : vector<8x1xf32> to vector<8x32xf32>
    %103 = arith.addf %101, %102 : vector<8x32xf32>
    %104 = arith.addf %93, %103 : vector<8x32xf32>
    %cst_37 = arith.constant dense<0.000000e+00> : vector<32xf32>
    %105 = vector.multi_reduction <add>, %104, %cst_37 [0] : vector<8x32xf32> to vector<32xf32>
    %106 = vector.shape_cast %105 : vector<32xf32> to vector<1x32xf32>
    %cst_38 = arith.constant 8.000000e+00 : f32
    %107 = vector.broadcast %cst_38 : f32 to vector<1x32xf32>
    %108 = arith.divf %106, %107 : vector<1x32xf32>
    %109 = vector.broadcast %108 : vector<1x32xf32> to vector<8x32xf32>
    %110 = arith.subf %104, %109 : vector<8x32xf32>
    %111 = arith.mulf %110, %110 : vector<8x32xf32>
    %cst_39 = arith.constant dense<0.000000e+00> : vector<32xf32>
    %112 = vector.multi_reduction <add>, %111, %cst_39 [0] : vector<8x32xf32> to vector<32xf32>
    %113 = vector.shape_cast %112 : vector<32xf32> to vector<1x32xf32>
    %cst_40 = arith.constant 8.000000e+00 : f32
    %114 = vector.broadcast %cst_40 : f32 to vector<1x32xf32>
    %115 = arith.divf %113, %114 : vector<1x32xf32>
    %cst_41 = arith.constant 1.000000e-03 : f32
    %116 = vector.broadcast %cst_41 : f32 to vector<1x32xf32>
    %117 = arith.addf %115, %116 : vector<1x32xf32>
    %118 = math.rsqrt %117 : vector<1x32xf32>
    %119 = vector.broadcast %118 : vector<1x32xf32> to vector<8x32xf32>
    %120 = arith.mulf %110, %119 : vector<8x32xf32>
    %121 = vector.broadcast %9 : vector<1x32xf32> to vector<8x32xf32>
    %122 = arith.mulf %120, %121 : vector<8x32xf32>
    %123 = vector.broadcast %10 : vector<1x32xf32> to vector<8x32xf32>
    %124 = arith.addf %122, %123 : vector<8x32xf32>
    %cst_42 = arith.constant 0.000000e+00 : f32
    %125 = vector.broadcast %cst_42 : f32 to vector<8x32xf32>
    %126 = arith.maximumf %124, %125 : vector<8x32xf32>
    %127 = arith.truncf %126 : vector<8x32xf32> to vector<8x32xbf16>
    %cst_43 = arith.constant dense<0.000000e+00> : vector<8x32xf32>
    %128 = tpu.matmul %127, %21, %cst_43 {dimension_numbers = #tpu.dot_dimension_numbers<[1], [0], [0], [1], [0, 0, 1, 1], [], []>} : vector<8x32xbf16>, vector<32x32xbf16>, vector<8x32xf32> -> vector<8x32xf32>
    %129 = vector.broadcast %12 : vector<1x32xf32> to vector<8x32xf32>
    %130 = arith.addf %128, %129 : vector<8x32xf32>
    %131 = arith.addf %130, %67 : vector<8x32xf32>
    %132 = vector.broadcast %5 : vector<32x1xf32> to vector<32x16xf32>
    %133 = arith.mulf %40, %132 : vector<32x16xf32>
    %134 = vector.broadcast %6 : vector<32x1xf32> to vector<32x16xf32>
    %135 = arith.addf %133, %134 : vector<32x16xf32>
    %cst_44 = arith.constant 0.000000e+00 : f32
    %136 = vector.broadcast %cst_44 : f32 to vector<32x16xf32>
    %137 = arith.maximumf %135, %136 : vector<32x16xf32>
    %138 = arith.truncf %137 : vector<32x16xf32> to vector<32x16xbf16>
    %cst_45 = arith.constant dense<0.000000e+00> : vector<8x16xf32>
    %139 = tpu.matmul %22, %138, %cst_45 {dimension_numbers = #tpu.dot_dimension_numbers<[1], [0], [0], [1], [0, 0, 1, 1], [], []>} : vector<8x32xbf16>, vector<32x16xbf16>, vector<8x16xf32> -> vector<8x16xf32>
    %140 = vector.broadcast %14 : vector<8x1xf32> to vector<8x16xf32>
    %141 = arith.addf %139, %140 : vector<8x16xf32>
    %cst_46 = arith.constant dense<0xFF800000> : vector<16xf32>
    %142 = vector.multi_reduction <maximumf>, %141, %cst_46 [0] : vector<8x16xf32> to vector<16xf32>
    %143 = vector.shape_cast %142 : vector<16xf32> to vector<1x16xf32>
    %144 = vector.broadcast %143 : vector<1x16xf32> to vector<8x16xf32>
    %145 = arith.subf %141, %144 : vector<8x16xf32>
    %146 = math.exp %145 : vector<8x16xf32>
    %cst_47 = arith.constant dense<0.000000e+00> : vector<16xf32>
    %147 = vector.multi_reduction <add>, %146, %cst_47 [0] : vector<8x16xf32> to vector<16xf32>
    %148 = vector.shape_cast %147 : vector<16xf32> to vector<1x16xf32>
    %149 = tpu.reciprocal %148 {approx = true} : vector<1x16xf32> -> vector<1x16xf32>
    %150 = arith.mulf %148, %149 : vector<1x16xf32>
    %cst_48 = arith.constant 2.000000e+00 : f32
    %151 = vector.broadcast %cst_48 : f32 to vector<1x16xf32>
    %152 = arith.subf %151, %150 : vector<1x16xf32>
    %153 = arith.mulf %149, %152 : vector<1x16xf32>
    %154 = vector.broadcast %153 : vector<1x16xf32> to vector<8x16xf32>
    %155 = arith.mulf %146, %154 : vector<8x16xf32>
    %156 = arith.truncf %131 : vector<8x32xf32> to vector<8x32xbf16>
    %157 = arith.truncf %155 : vector<8x16xf32> to vector<8x16xbf16>
    %cst_49 = arith.constant dense<0.000000e+00> : vector<32x16xf32>
    %158 = tpu.matmul %156, %157, %cst_49 {dimension_numbers = #tpu.dot_dimension_numbers<[0], [0], [1], [1], [0, 1, 1, 1], [], []>} : vector<8x32xbf16>, vector<8x16xbf16>, vector<32x16xf32> -> vector<32x16xf32>
    %c0_50 = arith.constant 0 : index
    %c0_51 = arith.constant 0 : index
    %c0_52 = arith.constant 0 : index
    %159 = vector.load %arg10[%c0_50, %c0_51, %c0_52] : memref<1x32x16xf32, #tpu.memory_space<vmem>>, vector<1x32x16xf32>
    %160 = vector.shape_cast %159 : vector<1x32x16xf32> to vector<32x16xf32>
    %161 = vector.shape_cast %158 : vector<32x16xf32> to vector<1x32x16xf32>
    tpu.vector_store %arg10[%c0_50, %c0_51, %c0_52], %161 {strides = array<i32>} : memref<1x32x16xf32, #tpu.memory_space<vmem>>, vector<1x32x16xf32>,
    return
  }
  func.func @transform_0(%arg0: i32) -> (i32, i32, i32) {
    %c0_i32 = arith.constant 0 : i32
    %c0_i32_0 = arith.constant 0 : i32
    %c0_i32_1 = arith.constant 0 : i32
    return %arg0, %c0_i32, %c0_i32_0 : i32, i32, i32
  }
  func.func @transform_1(%arg0: i32) -> (i32, i32) {
    %c0_i32 = arith.constant 0 : i32
    %c0_i32_0 = arith.constant 0 : i32
    %c0_i32_1 = arith.constant 0 : i32
    return %c0_i32, %c0_i32_0 : i32, i32
  }
  func.func @transform_2(%arg0: i32) -> (i32, i32) {
    %c0_i32 = arith.constant 0 : i32
    %c0_i32_0 = arith.constant 0 : i32
    %c0_i32_1 = arith.constant 0 : i32
    return %c0_i32, %c0_i32_0 : i32, i32
  }
  func.func @transform_3(%arg0: i32) -> (i32, i32) {
    %c0_i32 = arith.constant 0 : i32
    %c0_i32_0 = arith.constant 0 : i32
    %c0_i32_1 = arith.constant 0 : i32
    return %c0_i32, %c0_i32_0 : i32, i32
  }
  func.func @transform_4(%arg0: i32) -> (i32, i32) {
    %c0_i32 = arith.constant 0 : i32
    %c0_i32_0 = arith.constant 0 : i32
    %c0_i32_1 = arith.constant 0 : i32
    return %c0_i32, %c0_i32_0 : i32, i32
  }
  func.func @transform_5(%arg0: i32) -> (i32, i32) {
    %c0_i32 = arith.constant 0 : i32
    %c0_i32_0 = arith.constant 0 : i32
    %c0_i32_1 = arith.constant 0 : i32
    return %c0_i32, %c0_i32_0 : i32, i32
  }
  func.func @transform_6(%arg0: i32) -> (i32, i32) {
    %c0_i32 = arith.constant 0 : i32
    %c0_i32_0 = arith.constant 0 : i32
    %c0_i32_1 = arith.constant 0 : i32
    return %c0_i32, %c0_i32_0 : i32, i32
  }
  func.func @transform_7(%arg0: i32) -> (i32, i32) {
    %c0_i32 = arith.constant 0 : i32
    %c0_i32_0 = arith.constant 0 : i32
    %c0_i32_1 = arith.constant 0 : i32
    return %c0_i32, %c0_i32_0 : i32, i32
  }
  func.func @transform_8(%arg0: i32) -> (i32, i32) {
    %c0_i32 = arith.constant 0 : i32
    %c0_i32_0 = arith.constant 0 : i32
    %c0_i32_1 = arith.constant 0 : i32
    return %c0_i32, %c0_i32_0 : i32, i32
  }
  func.func @transform_9(%arg0: i32) -> (i32, i32, i32) {
    %c0_i32 = arith.constant 0 : i32
    %c0_i32_0 = arith.constant 0 : i32
    %c0_i32_1 = arith.constant 0 : i32
    return %arg0, %c0_i32, %c0_i32_0 : i32, i32, i32
  }
}

</mosaic_0001>

<bundles_post_ra>
// kernel: tpu_custom_call.1
= control target key start
LH: loop header
LB: loop body
LE: loop exit
PB: predicated region body
PF: predicated region fallthrough
CT: control target
= control target key end

     0   :  { %s1293_s30 = smov 0   ;;  %s1509_s0 = inlined_call_operand.vmem [shape: f32[2,32,16], index: 0, kind: input, shape index: {}]   ;;  %s1510_s1 = inlined_call_operand.vmem [shape: f32[32,4], index: 1, kind: input, shape index: {}]   ;;  %s1511_s2 = inlined_call_operand.vmem [shape: f32[6,32], index: 2, kind: input, shape index: {}]   ;;  %s1512_s3 = inlined_call_operand.vmem [shape: f32[8,5], index: 3, kind: input, shape index: {}]   ;;  %s1513_s4 = inlined_call_operand.vmem [shape: bf16[8,32], index: 4, kind: input, shape index: {}]   ;;  %s1514_s5 = inlined_call_operand.vmem [shape: bf16[32,32], index: 5, kind: input, shape index: {}]   ;;  %s1515_s6 = inlined_call_operand.vmem [shape: bf16[8,8], index: 6, kind: input, shape index: {}]   ;;  %s1516_s7 = inlined_call_operand.vmem [shape: bf16[32,32], index: 7, kind: input, shape index: {}]   ;;  %s1517_s8 = inlined_call_operand.vmem [shape: bf16[8,32], index: 8, kind: input, shape index: {}]   ;;  %s1518_s9 = inlined_call_operand.vmem [shape: f32[2,32,16], index: 9, kind: output, shape index: {}]  }
   0x1 LB: > { %s1075_s10 = sadd.s32 4294967295, %s1234_s30   ;;  %p1079_p0 = scmp.ge.s32.totalorder %s1234_s30, 1  ;;  %s1234_s30 = sphi %s1293_s30, %s19_s30  }
   0x2   : > { %p287_p1 = scmp.lt.s32.totalorder %s1234_s30, 3 }
   0x4   : > { %p288_p2 = pnand %p1079_p0, %p287_p1 }
   0x5   : > { %p323_p3 = scmp.lt.s32.totalorder (!%p288_p2), %s1075_s10, 1  ;;  %vm355_vm0 = vcmask (!%p288_p2), 130048   ;;  %v1236_v8 = vmov (!%p288_p2), 0   ;;  %v1338_v24 = vld [vmem:[%s1510_s1 + $0x8] sm:$0xff] (!%p288_p2)  ;;  %v1344_v25 = vld [vmem:[%s1510_s1] sm:$0xff] (!%p288_p2)  ;;  %v1237_v26 = vmov (!%p288_p2), 1  }
   0x6   : > { %291 = sbr.rel (%p288_p2) target bundleno = 2262 (0x8d6), region = 56  ;;  %1189 = vset.pattern.permute.xlu1 (!%p288_p2), %v1236_v8  ;;  %1188 = vset.pattern.permute.xlu0 (!%p288_p2), %v1236_v8  ;;  %v1353_v27 = vld [vmem:[%s1510_s1 + $0x10] sm:$0xff] (!%p288_p2)  ;;  %v1359_v28 = vld [vmem:[%s1510_s1 + $0x18] sm:$0xff] (!%p288_p2)  ;;  %v1238_v29 = vmov (!%p288_p2), 0.0   ;;  %vm1239_vm1 = vmmov (!%p288_p2), 0   ;;  %v1376_v35 = vld [vmem:[%s1512_s3] sm:$0xff] (!%p288_p2) }
   0x7   : > { %1120 = vmatprep.subr.bf16.mxu0 (!%p288_p2), %v1238_v29  ;;  %1128 = vmatprep.subr.bf16.mxu1 (!%p288_p2), %v1238_v29  ;;  %vm464_vm2 = vcmask (!%p288_p2), 261120   ;;  %vm687_vm3 = vcmask (!%p288_p2), 1043456   ;;  %vm683_vm4 = vcmask (!%p288_p2), 64512  }
   0x8   : > { %1124 = vmatprep.mubr.msk.bf16.mxu0 (!%p288_p2), %vm1239_vm1, %v1238_v29  ;;  %1132 = vmatprep.mubr.msk.bf16.mxu1 (!%p288_p2), %vm1239_vm1, %v1238_v29 }
   0xd   : > { %s1520_s10 = smov (!%p323_p3, %s1075_s10), 1 }
   0xe   : > { %s1098_s11 = sshll.u32 %s1520_s10, 5 }
   0xf   : > { %s327_s14 = scalar_lea.vmem %s1509_s0, %s1098_s11  ;;  %s332_s25 = scalar_lea.vmem %s1518_s9, %s1098_s11 }
  0x10   : > { %v1309_v0 = vld [vmem:[%s327_s14] sm:$0xff]  ;;  %v1311_v1 = vld [vmem:[%s327_s14 + $0x10] sm:$0xff]  ;;  %v1313_v2 = vld [vmem:[%s327_s14 + $0x8] sm:$0xff] }
  0x11   : > { %v356_v3 = vsel %vm355_vm0, %v1309_v0, 0.0  ;;  %v362_v4 = vsel %vm355_vm0, %v1311_v1, 0.0  ;;  %v1319_v5 = vld [vmem:[%s327_s14 + $0x18] sm:$0xff]  ;;  %v359_v6 = vsel %vm355_vm0, %v1313_v2, 0.0 }
  0x12   : > { %357 = vadd.xlane.f32.xlu0 %v356_v3  ;;  %363 = vadd.xlane.f32.xlu1 %v362_v4  ;;  %v365_v7 = vsel %vm355_vm0, %v1319_v5, 0.0 }
  0x16   : > { %360 = vadd.xlane.f32.xlu0 %v359_v6  ;;  %366 = vadd.xlane.f32.xlu1 %v365_v7 }
  0x9f   : > { %v358_v9 = vpop.xlane.xlu0 %357  ;;  %v364_v10 = vpop.xlane.xlu1 %363 }
  0xa0   : > { %v369_v11 = vmul.f32 0.0625, %v358_v9  ;;  %v371_v12 = vmul.f32 0.0625, %v364_v10 }
  0xa2   : > { %v373_v13 = vsub.f32 %v1309_v0, %v369_v11  ;;  %v1327_v14 = vsub.f32 %v1311_v1, %v371_v12 }
  0xa3   : > { %v361_v15 = vpop.xlane.xlu0 %360  ;;  %v367_v30 = vpop.xlane.xlu1 %366 }
  0xa4   : > { %v370_v16 = vmul.f32 0.0625, %v361_v15  ;;  %v377_v17 = vmul.f32 %v373_v13, %v373_v13  ;;  %v379_v18 = vmul.f32 %v1327_v14, %v1327_v14  ;;  %v372_v31 = vmul.f32 0.0625, %v367_v30 }
  0xa6   : > { %v374_v19 = vsub.f32 %v1313_v2, %v370_v16  ;;  %v381_v20 = vsel %vm355_vm0, %v377_v17, 0.0  ;;  %v387_v21 = vsel %vm355_vm0, %v379_v18, 0.0  ;;  %v376_v32 = vsub.f32 %v1319_v5, %v372_v31 }
  0xa7   : > { %382 = vadd.xlane.f32.xlu0 %v381_v20  ;;  %v1241_v20 = vmov 3  }
  0xa8   : > { %v378_v22 = vmul.f32 %v374_v19, %v374_v19  ;;  %v380_v33 = vmul.f32 %v376_v32, %v376_v32 }
  0xaa   : > { %v384_v23 = vsel %vm355_vm0, %v378_v22, 0.0  ;;  %v390_v34 = vsel %vm355_vm0, %v380_v33, 0.0 }
  0xab   : > { %388 = vadd.xlane.f32.xlu0 %v387_v21  ;;  %385 = vadd.xlane.f32.xlu1 %v384_v23 }
  0xbc   : > { %416 = vperm.xlu1 %1189, %v1338_v24  }
  0xc0   : > { %1190 = vset.pattern.permute.xlu1 %v1237_v26 }
  0xc1   : > { %434 = vperm.xlu1 %1190, %v1344_v25   ;;  %411 = vperm.xlu0 %1188, %v1344_v25  }
  0xc5   : > { %438 = vperm.xlu1 %1190, %v1338_v24  }
  0xc9   : > { %1191 = vset.pattern.permute.xlu1 %v1236_v8 }
  0xca   : > { %421 = vperm.xlu1 %1191, %v1353_v27  }
  0xce   : > { %426 = vperm.xlu1 %1191, %v1359_v28  }
  0xd2   : > { %1192 = vset.pattern.permute.xlu1 %v1237_v26 }
  0xd3   : > { %442 = vperm.xlu1 %1192, %v1353_v27  }
  0xf7   : > { %391 = vadd.xlane.f32.xlu1 %v390_v34 }
 0x108   : > { %446 = vperm.xlu1 %1192, %v1359_v28  }
 0x10c   : > { %1193 = vset.pattern.permute.xlu1 %v1236_v8 }
 0x10d   : > { %461 = vperm.xlu1 %1193, %v1376_v35  }
 0x111   : > { %1195 = vset.pattern.permute.xlu1 %v1241_v20 }
 0x134   : > { %v383_v36 = vpop.xlane.xlu0 %382 }
 0x135   : > { %v393_v37 = vmul.f32 0.0625, %v383_v36 }
 0x137   : > { %v397_v38 = vadd.f32 0.001, %v393_v37 }
 0x138   : > { %v386_v39 = vpop.xlane.xlu1 %385  ;;  %v389_v42 = vpop.xlane.xlu0 %388 }
 0x139   : > { %1208 = vrsqrt.f32 %v397_v38  ;;  %v394_v40 = vmul.f32 0.0625, %v386_v39  ;;  %v395_v60 = vmul.f32 0.0625, %v389_v42  ;;  %v1242_v42 = vmov 4  }
 0x13b   : > { %v398_v41 = vadd.f32 0.001, %v394_v40  ;;  %v399_v61 = vadd.f32 0.001, %v395_v60  ;;  %v523_v40 = vpack.c.bf16 %v1313_v2, %v1309_v0 }
 0x13c   : > { %v417_v43 = vpop.permute.xlu1 %416 }
 0x13d   : > { %1210 = vrsqrt.f32 %v398_v41  ;;  %v529_v41 = vsel %vm355_vm0, %v523_v40, 0 }
 0x13e   : > { %1212 = vrsqrt.f32 %v399_v61  ;;  %1129 = vmatpush3.bf16.xpose.msra.mxu1 %v529_v41 }
 0x13f   : > { %1130 = vmatprep.subr.bf16.mxu1 %v1238_v29 }
 0x140   : > { %v412_v45 = vpop.permute.xlu0 %411  ;;  %v435_v47 = vpop.permute.xlu1 %434 }
 0x143   : > { %v1209_v44 = vpop.eup %1208 }
 0x144   : > { %v1379_v46 = vmul.f32 %v1209_v44, %v373_v13  ;;  %v439_v53 = vpop.permute.xlu1 %438 }
 0x146   : > { %v429_v48 = vmul.f32 %v412_v45, %v1379_v46 }
 0x147   : > { %v1211_v49 = vpop.eup %1210 }
 0x148   : > { %v1382_v50 = vmul.f32 %v1211_v49, %v374_v19  ;;  %v449_v52 = vadd.f32 %v435_v47, %v429_v48  ;;  %v1213_v6 = vpop.eup %1212  ;;  %v340_v19 = vld [vmem:[%s1513_s4] sm:$0xf] }
 0x149   : > { %v422_v58 = vpop.permute.xlu1 %421  ;;  %v1387_v7 = vmul.f32 %v1213_v6, %v1327_v14  ;;  %v1240_v14 = vmov 2  }
 0x14a   : > { %v430_v51 = vmul.f32 %v417_v43, %v1382_v50  ;;  %v453_v56 = vmax.f32 %v449_v52, 0.0  ;;  %1194 = vset.pattern.permute.xlu0 %v1240_v14 }
 0x14b   : > { %v431_v9 = vmul.f32 %v422_v58, %v1387_v7 }
 0x14c   : > { %v450_v54 = vadd.f32 %v439_v53, %v430_v51 }
 0x14d   : > { %v427_v59 = vpop.permute.xlu1 %426 }
 0x14e   : > { %v454_v55 = vmax.f32 %v450_v54, 0.0 }
 0x150   : > { %v457_v57 = vpack.c.bf16 %v454_v55, %v453_v56 }
 0x152   : > { %1121 = vmatpush3.bf16.msra.mxu0 %v457_v57  ;;  %v443_v62 = vpop.permute.xlu1 %442 }
 0x153   : > { %1122 = vmatprep.subr.bf16.mxu0 %v1238_v29  ;;  %v451_v11 = vadd.f32 %v443_v62, %v431_v9  ;;  %v596_v9 = vlaneseq }
 0x155   : > { %v455_v16 = vmax.f32 %v451_v11, 0.0 }
 0x184   : > { %v392_v63 = vpop.xlane.xlu1 %391 }
 0x185   : > { %v396_v3 = vmul.f32 0.0625, %v392_v63 }
 0x187   : > { %v400_v4 = vadd.f32 0.001, %v396_v3 }
 0x188   : > { %v447_v13 = vpop.permute.xlu1 %446 }
 0x189   : > { %1214 = vrsqrt.f32 %v400_v4 }
 0x18c   : > { %v462_v21 = vpop.permute.xlu1 %461 }
 0x193   : > { %v1215_v8 = vpop.eup %1214 }
 0x194   : > { %v1390_v10 = vmul.f32 %v1215_v8, %v376_v32 }
 0x196   : > { %v432_v12 = vmul.f32 %v427_v59, %v1390_v10 }
 0x198   : > { %v452_v15 = vadd.f32 %v447_v13, %v432_v12  ;;  %v1441_v12 = vshrl.u32 %v596_v9, 7 }
 0x19a   : > { %v456_v17 = vmax.f32 %v452_v15, 0.0  ;;  %v598_v13 = vsub.s32 0, %v1441_v12  ;;  %v1447_v15 = vld [vmem:[%s1511_s2] sm:$0x3f] }
 0x19c   : > { %v458_v18 = vpack.c.bf16 %v456_v17, %v455_v16  ;;  %v603_v16 = vsub.s32 1, %v1441_v12  ;;  %v599_v17 = vrot.slane %v1447_v15, %v598_v13 }
 0x19e   : > { %1123 = vmatpush3.bf16.msra.mxu0 %v458_v18 }
 0x19f   : > { %1136 = vmatprep.subr.bf16.mxu0 %v1238_v29 }
 0x1a1   : > { %1125 = vmatmul.mubr.msk.bf16.vlgmr.msra.gmra.mrb[0].mxu0 %vm464_vm2, %v340_v19 }
 0x1a2   : > { %1140 = vmatprep.mubr.msk.bf16.mxu0 %vm1239_vm1, %v1238_v29 }
 0x274   : > { %v502_v22 = vpop.f32.mrb[0].mxu0 }
 0x275   : > { %v503_v23 = vadd.f32 %v502_v22, %v462_v21  ;;  %v1126_v30 = vpop.f32.mrb[1].mxu0 }
 0x276   : > { %v505_v31 = vpop.f32.mrb[2].mxu0 }
 0x277   : > { %v1127_v32 = vpop.f32.mrb[3].mxu0  ;;  %v508_v33 = vsel %vm355_vm0, %v503_v23, -inf }
 0x278   : > { %509 = vmax.xlane.f32.xlu0 %v508_v33 }
 0x28e   : > { %668 = vperm.xlu0 %1194, %v1376_v35  }
 0x292   : > { %838 = vperm.xlu0 %1194, %v1359_v28  }
 0x296   : > { %1201 = vset.pattern.permute.xlu0 %v1241_v20 }
 0x297   : > { %858 = vperm.xlu0 %1201, %v1359_v28   ;;  %v524_v28 = vpack.c.bf16 %v1319_v5, %v1311_v1 }
 0x299   : > { %v532_v43 = vsel %vm355_vm0, %v524_v28, 0 }
 0x29a   : > { %1131 = vmatpush3.bf16.xpose.msra.mxu1 %v532_v43 }
 0x29b   : > { %1203 = vset.pattern.permute.xlu0 %v1237_v26  ;;  %1150 = vmatprep.subr.bf16.mxu1 %v1238_v29 }
 0x305   : > { %v510_v34 = vpop.xlane.xlu0 %509 }
 0x306   : > { %v511_v36 = vsub.f32 %v503_v23, %v510_v34 }
 0x308   : > { %v512_v37 = vmul.f32 1.442695, %v511_v36  ;;  %v610_v36 = vsub.s32 4, %v1441_v12 }
 0x30a   : > { %1216 = vpow2.f32 %v512_v37 }
 0x314   : > { %v1217_v38 = vpop.eup %1216 }
 0x315   : > { %v514_v39 = vsel %vm355_vm0, %v1217_v38, 0.0 }
 0x316   : > { %515 = vadd.xlane.f32.xlu1 %v514_v39  ;;  %v611_v39 = vrot.slane %v1447_v15, %v610_v36  ;;  %v755_v36 = vsub.s32 2, %v1441_v12 }
 0x327   : > { %673 = vperm.xlu1 %1195, %v1376_v35  }
 0x32b   : > { %1196 = vset.pattern.permute.xlu1 %v1242_v42 }
 0x32c   : > { %680 = vperm.xlu1 %1196, %v1376_v35  }
 0x330   : > { %1197 = vset.pattern.permute.xlu1 %v1240_v14 }
 0x331   : > { %826 = vperm.xlu1 %1197, %v1344_v25  }
 0x335   : > { %830 = vperm.xlu1 %1197, %v1338_v24  }
 0x339   : > { %1198 = vset.pattern.permute.xlu1 %v1241_v20 }
 0x33a   : > { %846 = vperm.xlu1 %1198, %v1344_v25  }
 0x33e   : > { %850 = vperm.xlu1 %1198, %v1338_v24   ;;  %v1204_v24 = vld [vmem:[%s1514_s5] sm:$0xff]  }
 0x33f   : > { %1137 = vmatpush3.bf16.msra.mxu0 %v1204_v24 }
 0x340   : > { %1138 = vmatprep.subr.bf16.mxu0 %v1238_v29 }
 0x342   : > { %1199 = vset.pattern.permute.xlu1 %v1240_v14  ;;  %v604_v14 = vrot.slane %v1447_v15, %v603_v16 }
 0x343   : > { %834 = vperm.xlu1 %1199, %v1353_v27  }
 0x347   : > { %1200 = vset.pattern.permute.xlu1 %v1241_v20 }
 0x348   : > { %854 = vperm.xlu1 %1200, %v1353_v27  }
 0x34c   : > { %1202 = vset.pattern.permute.xlu1 %v1237_v26  ;;  %v1205_v26 = vld [vmem:[%s1514_s5 + $0x8] sm:$0xff]  }
 0x34d   : > { %872 = vperm.xlu1 %1202, %v1376_v35   ;;  %1139 = vmatpush3.bf16.msra.mxu0 %v1205_v26 }
 0x34e   : > { %1144 = vmatprep.subr.bf16.mxu0 %v1238_v29 }
 0x3a3   : > { %v516_v0 = vpop.xlane.xlu1 %515 }
 0x3a4   : > { %1218 = vrcp.f32 %v516_v0 }
 0x3a7   : > { %v674_v30 = vpop.permute.xlu1 %673 }
 0x3ab   : > { %v681_v31 = vpop.permute.xlu1 %680 }
 0x3ae   : > { %v1219_v1 = vpop.eup %1218 }
 0x3af   : > { %v518_v2 = vmul.f32 %v1219_v1, %v516_v0 }
 0x3b0   : > { %v827_v32 = vpop.permute.xlu1 %826 }
 0x3b1   : > { %v519_v5 = vsub.f32 2.0, %v518_v2 }
 0x3b3   : > { %v520_v44 = vmul.f32 %v1219_v1, %v519_v5 }
 0x3b4   : > { %v831_v33 = vpop.permute.xlu1 %830 }
 0x3b5   : > { %v521_v45 = vmul.f32 %v1217_v38, %v520_v44  ;;  %v669_v38 = vpop.permute.xlu0 %668  ;;  %v842_v5 = vmul.f32 %v831_v33, %v1382_v50 }
 0x3b7   : > { %v522_v25 = vpack.c.bf16 %v521_v45, %v521_v45  ;;  %v841_v45 = vmul.f32 %v827_v32, %v1379_v46  ;;  %v345_v46 = vld [vmem:[%s1515_s6] sm:$0xf] }
 0x3b9   : > { %1133 = vmatmul.mubr.msk.bf16.vlgmr.msra.gmra.mrb[0].mxu1 %vm355_vm0, %v522_v25  ;;  %v847_v34 = vpop.permute.xlu1 %846  ;;  %v839_v0 = vpop.permute.xlu0 %838 }
 0x3ba   : > { %1154 = vmatprep.mubr.msk.bf16.mxu1 %vm1239_vm1, %v1238_v29 }
 0x3bd   : > { %v851_v37 = vpop.permute.xlu1 %850 }
 0x3be   : > { %v862_v25 = vadd.f32 %v851_v37, %v842_v5  ;;  %v760_v37 = vsub.s32 3, %v1441_v12 }
 0x3c2   : > { %v835_v41 = vpop.permute.xlu1 %834 }
 0x3c7   : > { %v855_v24 = vpop.permute.xlu1 %854 }
 0x48c   : > { %v1435_v27 = vpop.f32.mrb[0].mxu1 }
 0x48d   : > { %v574_v35 = vsel %vm464_vm2, %v1435_v27, 0.0  ;;  %v1134_v47 = vpop.f32.mrb[1].mxu1 }
 0x48e   : > { %v575_v48 = vrot.slane %v574_v35, 4  ;;  %v571_v49 = vpop.f32.mrb[2].mxu1  ;;  %v843_v47 = vmul.f32 %v835_v41, %v1387_v7  ;;  %v761_v41 = vrot.slane %v1447_v15, %v760_v37 }
 0x48f   : > { %v1135_v51 = vpop.f32.mrb[3].mxu1 }
 0x490   : > { %v576_v52 = vadd.f32 %v575_v48, %v574_v35  ;;  %v861_v35 = vadd.f32 %v847_v34, %v841_v45  ;;  %v859_v48 = vpop.permute.xlu0 %858  ;;  %v844_v51 = vmul.f32 %v839_v0, %v1390_v10 }
 0x492   : > { %v577_v53 = vrot.slane %v576_v52, 2  ;;  %v865_v50 = vmax.f32 %v861_v35, 0.0 }
 0x494   : > { %v578_v54 = vadd.f32 %v577_v53, %v576_v52  ;;  %v866_v52 = vmax.f32 %v862_v25, 0.0  ;;  %v863_v53 = vadd.f32 %v855_v24, %v843_v47 }
 0x496   : > { %v579_v55 = vrot.slane %v578_v54, 1  ;;  %v869_v7 = vpack.c.bf16 %v866_v52, %v865_v50 }
 0x498   : > { %v580_v56 = vadd.f32 %v579_v55, %v578_v54  ;;  %v864_v55 = vadd.f32 %v859_v48, %v844_v51 }
 0x49a   : > { %v582_v57 = vmul.f32 0.125, %v580_v56  ;;  %v867_v56 = vmax.f32 %v863_v53, 0.0 }
 0x49c   : > { %v583_v58 = vsub.f32 %v1435_v27, %v582_v57  ;;  %v868_v57 = vmax.f32 %v864_v55, 0.0 }
 0x49e   : > { %v584_v59 = vmul.f32 %v583_v58, %v583_v58  ;;  %v870_v10 = vpack.c.bf16 %v868_v57, %v867_v56 }
 0x4a0   : > { %v585_v60 = vsel %vm464_vm2, %v584_v59, 0.0  ;;  %v1207_v59 = vld [vmem:[%s1516_s7 + $0x8] sm:$0xff]  }
 0x4a1   : > { %v586_v61 = vrot.slane %v585_v60, 4 }
 0x4a3   : > { %v587_v62 = vadd.f32 %v586_v61, %v585_v60  ;;  %v350_v60 = vld [vmem:[%s1517_s8] sm:$0xf] }
 0x4a5   : > { %v588_v63 = vrot.slane %v587_v62, 2 }
 0x4a7   : > { %v589_v3 = vadd.f32 %v588_v63, %v587_v62 }
 0x4a9   : > { %v590_v4 = vrot.slane %v589_v3, 1 }
 0x4ab   : > { %v591_v6 = vadd.f32 %v590_v4, %v589_v3 }
 0x4ad   : > { %v592_v8 = vmul.f32 0.125, %v591_v6 }
 0x4af   : > { %v593_v11 = vadd.f32 0.001, %v592_v8 }
 0x4b1   : > { %1220 = vrsqrt.f32 %v593_v11 }
 0x4bb   : > { %v1221_v18 = vpop.eup %1220 }
 0x4bc   : > { %v595_v19 = vmul.f32 %v1221_v18, %v583_v58  ;;  %v1206_v58 = vld [vmem:[%s1516_s7] sm:$0xff]  }
 0x4bd   : > { %1151 = vmatpush3.bf16.msra.mxu1 %v1206_v58 }
 0x4be   : > { %v600_v20 = vmul.f32 %v599_v17, %v595_v19  ;;  %1152 = vmatprep.subr.bf16.mxu1 %v1238_v29 }
 0x4c0   : > { %v605_v21 = vadd.f32 %v604_v14, %v600_v20 }
 0x4c1   : > { %1153 = vmatpush3.bf16.msra.mxu1 %v1207_v59 }
 0x4c2   : > { %v606_v22 = vmax.f32 %v605_v21, 0.0 }
 0x4c4   : > { %v607_v23 = vpack.c.bf16 %v606_v22, %v606_v22 }
 0x4c6   : > { %1141 = vmatmul.mubr.msk.bf16.vlgmr.msra.gmra.mrb[4].mxu0 %vm464_vm2, %v607_v23 }
 0x4c7   : > { %1146 = vmatprep.mubr.msk.bf16.mxu0 %vm1239_vm1, %v1238_v29 }
 0x599   : > { %v661_v40 = vpop.f32.mrb[4].mxu0 }
 0x59a   : > { %v662_v42 = vadd.f32 %v661_v40, %v611_v39  ;;  %v1142_v28 = vpop.f32.mrb[5].mxu0 }
 0x59b   : > { %v664_v43 = vpop.f32.mrb[6].mxu0 }
 0x59c   : > { %v671_v1 = vmul.f32 %v669_v38, %v662_v42  ;;  %v1143_v2 = vpop.f32.mrb[7].mxu0  ;;  %v756_v38 = vrot.slane %v1447_v15, %v755_v36 }
 0x59e   : > { %v676_v44 = vadd.f32 %v674_v30, %v671_v1  ;;  %v873_v1 = vpop.permute.xlu1 %872 }
 0x5a0   : > { %v677_v26 = vmax.f32 %v676_v44, 0.0 }
 0x5a2   : > { %v678_v49 = vpack.c.bf16 %v677_v26, %v677_v26 }
 0x5a4   : > { %v689_v54 = vsel %vm687_vm3, %v678_v49, 0 }
 0x5a5   : > { %1145 = vmatpush3.bf16.msra.mxu0 %v689_v54 }
 0x5a6   : > { %1158 = vmatprep.subr.bf16.mxu0 %v1238_v29 }
 0x5a8   : > { %1147 = vmatmul.mubr.msk.bf16.vlgmr.msra.gmra.mrb[8].mxu0 %vm683_vm4, %v345_v46 }
 0x5a9   : > { %1159 = vmatpush3.bf16.msra.mxu0 %v869_v7  ;;  %1162 = vmatprep.mubr.msk.bf16.mxu0 %vm1239_vm1, %v1238_v29 }
 0x5aa   : > { %1160 = vmatprep.subr.bf16.mxu0 %v1238_v29 }
 0x5ad   : > { %1161 = vmatpush3.bf16.msra.mxu0 %v870_v10 }
 0x5b0   : > { %1163 = vmatmul.mubr.msk.bf16.vlgmr.msra.gmra.mrb[12].mxu0 %vm464_vm2, %v350_v60 }
 0x67b   : > { %v725_v61 = vpop.f32.mrb[8].mxu0 }
 0x67c   : > { %v726_v62 = vadd.f32 %v725_v61, %v681_v31  ;;  %v1148_v63 = vpop.f32.mrb[9].mxu0 }
 0x67d   : > { %v728_v3 = vpop.f32.mrb[10].mxu0 }
 0x67e   : > { %v731_v4 = vadd.f32 %v726_v62, %v662_v42  ;;  %v1149_v6 = vpop.f32.mrb[11].mxu0 }
 0x680   : > { %v732_v8 = vsel %vm464_vm2, %v731_v4, 0.0 }
 0x681   : > { %v733_v29 = vrot.slane %v732_v8, 4 }
 0x683   : > { %v734_v9 = vadd.f32 %v733_v29, %v732_v8  ;;  %v912_v2 = vpop.f32.mrb[12].mxu0 }
 0x684   : > { %v913_v5 = vadd.f32 %v912_v2, %v873_v1  ;;  %v1164_v44 = vpop.f32.mrb[13].mxu0 }
 0x685   : > { %v735_v11 = vrot.slane %v734_v9, 2  ;;  %v915_v45 = vpop.f32.mrb[14].mxu0 }
 0x686   : > { %v918_v25 = vsel %vm355_vm0, %v913_v5, -inf  ;;  %v1165_v24 = vpop.f32.mrb[15].mxu0 }
 0x687   : > { %v736_v13 = vadd.f32 %v735_v11, %v734_v9  ;;  %v919_v26 = vrot.slane %v918_v25, 4 }
 0x689   : > { %v737_v16 = vrot.slane %v736_v13, 1  ;;  %v920_v35 = vmax.f32 %v918_v25, %v919_v26 }
 0x68b   : > { %v738_v17 = vadd.f32 %v737_v16, %v736_v13  ;;  %v921_v47 = vrot.slane %v920_v35, 2 }
 0x68d   : > { %v739_v18 = vmul.f32 0.125, %v738_v17  ;;  %v922_v48 = vmax.f32 %v920_v35, %v921_v47 }
 0x68f   : > { %v740_v19 = vsub.f32 %v731_v4, %v739_v18  ;;  %v923_v49 = vrot.slane %v922_v48, 1  ;;  %v767_v4 = vsub.s32 5, %v1441_v12 }
 0x691   : > { %v741_v14 = vmul.f32 %v740_v19, %v740_v19  ;;  %v924_v51 = vmax.f32 %v922_v48, %v923_v49  ;;  %v768_v6 = vrot.slane %v1447_v15, %v767_v4 }
 0x693   : > { %v742_v20 = vsel %vm464_vm2, %v741_v14, 0.0  ;;  %v925_v52 = vsub.f32 %v913_v5, %v924_v51 }
 0x694   : > { %v743_v21 = vrot.slane %v742_v20, 4 }
 0x695   : > { %v926_v53 = vmul.f32 1.442695, %v925_v52 }
 0x696   : > { %v744_v22 = vadd.f32 %v743_v21, %v742_v20 }
 0x698   : > { %v745_v23 = vrot.slane %v744_v22, 2 }
 0x69a   : > { %v746_v30 = vadd.f32 %v745_v23, %v744_v22 }
 0x69c   : > { %v747_v31 = vrot.slane %v746_v30, 1 }
 0x69e   : > { %v748_v32 = vadd.f32 %v747_v31, %v746_v30 }
 0x6a0   : > { %v749_v33 = vmul.f32 0.125, %v748_v32 }
 0x6a2   : > { %v750_v34 = vadd.f32 0.001, %v749_v33 }
 0x6a4   : > { %1222 = vrsqrt.f32 %v750_v34 }
 0x6a5   : > { %1224 = vpow2.f32 %v926_v53 }
 0x6ae   : > { %v1223_v39 = vpop.eup %1222 }
 0x6af   : > { %v752_v40 = vmul.f32 %v1223_v39, %v740_v19  ;;  %v1225_v54 = vpop.eup %1224 }
 0x6b0   : > { %v928_v55 = vsel %vm355_vm0, %v1225_v54, 0.0 }
 0x6b1   : > { %v757_v42 = vmul.f32 %v756_v38, %v752_v40  ;;  %v929_v50 = vrot.slane %v928_v55, 4 }
 0x6b3   : > { %v762_v28 = vadd.f32 %v761_v41, %v757_v42  ;;  %v930_v46 = vadd.f32 %v929_v50, %v928_v55 }
 0x6b5   : > { %v763_v43 = vmax.f32 %v762_v28, 0.0  ;;  %v931_v7 = vrot.slane %v930_v46, 2 }
 0x6b7   : > { %v764_v0 = vpack.c.bf16 %v763_v43, %v763_v43  ;;  %v932_v56 = vadd.f32 %v931_v7, %v930_v46 }
 0x6b9   : > { %1155 = vmatmul.mubr.msk.bf16.vlgmr.msra.gmra.mrb[4].mxu1 %vm464_vm2, %v764_v0  ;;  %v933_v57 = vrot.slane %v932_v56, 1 }
 0x6bb   : > { %v934_v10 = vadd.f32 %v933_v57, %v932_v56 }
 0x6bd   : > { %1226 = vrcp.f32 %v934_v10 }
 0x6c7   : > { %v1227_v58 = vpop.eup %1226 }
 0x6c8   : > { %v936_v59 = vmul.f32 %v1227_v58, %v934_v10 }
 0x6ca   : > { %v937_v60 = vsub.f32 2.0, %v936_v59 }
 0x6cc   : > { %v938_v61 = vmul.f32 %v1227_v58, %v937_v60 }
 0x6ce   : > { %v939_v62 = vmul.f32 %v1225_v54, %v938_v61 }
 0x6d0   : > { %v941_v63 = vpack.c.bf16 %v939_v62, %v939_v62 }
 0x6d2   : > { %1172 = vmatprep.subr.msk.bf16.mxu1 %vm687_vm3, %v941_v63  ;;  %v965_v3 = vsel %vm687_vm3, %v941_v63, 0 }
 0x6d3   : > { %1167 = vmatpush3.bf16.msra.mxu1 %v965_v3 }
 0x78c   : > { %v818_v8 = vpop.f32.mrb[4].mxu1 }
 0x78d   : > { %v819_v29 = vadd.f32 %v818_v8, %v768_v6  ;;  %v1156_v9 = vpop.f32.mrb[5].mxu1 }
 0x78e   : > { %v821_v11 = vpop.f32.mrb[6].mxu1 }
 0x78f   : > { %v824_v13 = vadd.f32 %v819_v29, %v1435_v27  ;;  %v1157_v16 = vpop.f32.mrb[7].mxu1 }
 0x791   : > { %v940_v17 = vpack.c.bf16 %v824_v13, %v824_v13 }
 0x793   : > { %942 = vxpose.xlu1.c.b16.start.end [1/1] (short) (narrow) %v940_v17, 32 }
 0x7f9   : > { %v950_v18 = vpop.trf.xlu1 }
 0x7fa   : > { %1168 = vmatprep.mubr.msk.bf16.mxu1 %vm683_vm4, %v950_v18 }
 0x7fd   : > { %v951_v19 = vpop.trf.xlu1 }
 0x7fe   : > { %1169 = vmatmul.mubr.msk.bf16.vlgmr.msra.gmra.mrb[8].mxu1 %vm683_vm4, %v951_v19 }
 0x8d1   : > { %v1170_v12 = vpop.f32.mrb[8].mxu1 }
 0x8d2   : > { %1018 = vst.msk [vmem:[%s332_s25 + $0x10] sm:$0xff] %vm355_vm0, %v1170_v12  ;;  %v1001_v15 = vpop.f32.mrb[9].mxu1 }
 0x8d3   : > { %1016 = vst.msk [vmem:[%s332_s25] sm:$0xff] %vm355_vm0, %v1001_v15  ;;  %v1171_v27 = vpop.f32.mrb[10].mxu1 }
 0x8d4   : > { %1019 = vst.msk [vmem:[%s332_s25 + $0x18] sm:$0xff] %vm355_vm0, %v1171_v27  ;;  %v1004_v14 = vpop.f32.mrb[11].mxu1 }
 0x8d5   : > { %1017 = vst.msk [vmem:[%s332_s25 + $0x8] sm:$0xff] %vm355_vm0, %v1004_v14 }
 0x8d6 PF: > { %s19_s30 = sadd.s32 1, %s1234_s30  }
 0x8d7   : > { %p16_p4 = scmp.ge.s32.totalorder %s19_s30, 4  }
 0x8d9   :  { %18 = sbr.rel (!%p16_p4) target bundleno = 1 (0x1), region = 86 }

</bundles_post_ra>
